<compile_context>
chip_gen: v7x
topology: tpu7x:2x2x1
jax: 0.10.0
libtpu: 0.0.40
codegen_flags: <defaults>
</compile_context>

<pallas_src>
import functools

import jax
import jax.numpy as jnp
from jax import lax
from jax.experimental import pallas as pl
from jax.experimental.pallas import tpu as pltpu

D_PAD = 8          # matmul contraction depth (5 used lanes, padded to 8)
SENTINEL = 1.0e6   # phantom-point coordinate; dist(real, phantom) ~ 3e12


def _round_up(x, m):
    return ((x + m - 1) // m) * m


def _chamfer_kernel(p1_ref, p2_ref, l1_ref, l2_ref,
                    row_min, col_min, acc1, acc2,
                    *, N, M, TN, TM, N_pad, M_pad):
    ni = pl.program_id(1)
    mi = pl.program_id(2)
    n_tiles = pl.num_programs(1)
    m_tiles = pl.num_programs(2)

    m_off = pl.multiple_of(mi * TM, 128)

    p1 = p1_ref[0]                                # (TN, 8)
    p2 = p2_ref[0, :, pl.ds(m_off, TM)]           # (8, TM) slice of resident p2

    # Single MXU pass: dist = ||a||^2 + ||b||^2 - 2 a.b (norms folded into the
    # contraction); clamp guards cancellation in the expansion.
    dist = jnp.maximum(
        jnp.dot(p1, p2, preferred_element_type=jnp.float32), 0.0)    # (TN, TM)
    # torch's sqrt(dist)**2 is an identity for dist >= 0 and is omitted.

    # Per-batch accumulator init.
    @pl.when((ni == 0) & (mi == 0))
    def _():
        acc1[...] = jnp.zeros_like(acc1)
        acc2[...] = jnp.zeros_like(acc2)

    tile_row_min = jnp.min(dist, axis=1, keepdims=True)              # (TN, 1)
    tile_col_min = jnp.min(dist, axis=0, keepdims=True)              # (1, TM)

    # Running row-min across M tiles (loss1 direction).
    @pl.when(mi == 0)
    def _():
        row_min[...] = tile_row_min

    @pl.when(mi > 0)
    def _():
        row_min[...] = jnp.minimum(row_min[...], tile_row_min)

    # Running col-min across N tiles, lane-dense (8, M_pad) slab, row 0 used.
    @pl.when(ni == 0)
    def _():
        col_min[0:1, pl.ds(m_off, TM)] = tile_col_min

    @pl.when(ni > 0)
    def _():
        col_min[0:1, pl.ds(m_off, TM)] = jnp.minimum(
            col_min[0:1, pl.ds(m_off, TM)], tile_col_min)

    # After the last M tile the row-mins for this N tile are final.  Phantom
    # rows (sentinel points) are zeroed here — a (TN,1) vector op, once per ni.
    @pl.when(mi == m_tiles - 1)
    def _():
        rm = row_min[...]
        if N_pad != N:
            row_valid = (ni * TN +
                         lax.broadcasted_iota(jnp.int32, (TN, 1), 0)) < N
            rm = jnp.where(row_valid, rm, 0.0)
        acc1[...] += jnp.sum(rm, axis=(0, 1), keepdims=True)

    # During the last N tile each col-min slice becomes final; zero phantom
    # columns — a (1,TM) vector op, once per mi.
    @pl.when(ni == n_tiles - 1)
    def _():
        cm = col_min[0:1, pl.ds(m_off, TM)]
        if M_pad != M:
            col_valid = (m_off +
                         lax.broadcasted_iota(jnp.int32, (1, TM), 1)) < M
            cm = jnp.where(col_valid, cm, 0.0)
        acc2[...] += jnp.sum(cm, axis=(0, 1), keepdims=True)

    # Finalize both per-batch means after the last (ni, mi) tile.
    @pl.when((ni == n_tiles - 1) & (mi == m_tiles - 1))
    def _():
        l1_ref[...] = (acc1[...] * (1.0 / N)).reshape(1, 1, 1)
        l2_ref[...] = (acc2[...] * (1.0 / M)).reshape(1, 1, 1)


def chamfer_distance_loss(points1, points2, w1=1.0, w2=1.0, each_batch=False,
                          tile_n=None, tile_m=None):
    # check_parameters equivalents
    assert points1.ndim == 3 and points1.shape[-1] == 3
    assert points2.ndim == 3 and points2.shape[-1] == 3
    assert points1.shape[0] == points2.shape[0]

    B, N, _ = points1.shape
    _, M, _ = points2.shape

    p1 = jnp.asarray(points1, jnp.float32)
    p2 = jnp.asarray(points2, jnp.float32)

    # Bigger default tiles: the f32 (TN, TM) dist tile at 1024^2 is only 4 MiB.
    TN = tile_n if tile_n is not None else min(1024, _round_up(N, 8))
    TM = tile_m if tile_m is not None else min(1024, _round_up(M, 128))
    assert TN % 8 == 0 and TM % 128 == 0
    N_pad = _round_up(N, TN)
    M_pad = _round_up(M, TM)
    n_tiles = N_pad // TN
    m_tiles = M_pad // TM

    # Host-side feature construction.  Phantom points get a large finite
    # sentinel coordinate so their distances never win a min for real points;
    # sentinel^2 and cross terms (~3e12) stay well within f32 range.
    p1c = jnp.pad(p1, ((0, 0), (0, N_pad - N), (0, 0)),
                  constant_values=SENTINEL)                            # (B, N_pad, 3)
    p2c = jnp.pad(p2, ((0, 0), (0, M_pad - M), (0, 0)),
                  constant_values=SENTINEL)                            # (B, M_pad, 3)

    sq1 = jnp.sum(p1c * p1c, axis=-1, keepdims=True)                   # (B, N_pad, 1)
    sq2 = jnp.sum(p2c * p2c, axis=-1, keepdims=True)                   # (B, M_pad, 1)
    z1 = jnp.zeros((B, N_pad, D_PAD - 5), jnp.float32)
    z2 = jnp.zeros((B, M_pad, D_PAD - 5), jnp.float32)

    # dist = p1_feat @ p2_feat^T = ||a||^2 + ||b||^2 - 2 a.b, off the MXU.
    p1_feat = jnp.concatenate([-2.0 * p1c, jnp.ones_like(sq1), sq1, z1],
                              axis=-1)                                 # (B, N_pad, 8)
    p2_feat = jnp.concatenate([p2c, sq2, jnp.ones_like(sq2), z2],
                              axis=-1)                                 # (B, M_pad, 8)
    p2t = jnp.transpose(p2_feat, (0, 2, 1))                            # (B, 8, M_pad)

    kernel = functools.partial(_chamfer_kernel, N=N, M=M, TN=TN, TM=TM,
                               N_pad=N_pad, M_pad=M_pad)

    # Explicit VMEM budget (v5e scoped default is only 16 MiB); assumes the
    # per-batch resident p2 (8*M_pad*4 bytes) + col-min slab fit comfortably,
    # which holds for typical point-cloud sizes.
    vmem_est = (2 * TN * D_PAD * 4            # p1 tile, double-buffered
                + 2 * D_PAD * M_pad * 4       # p2 resident per batch, double-buffered
                + TN * 128 * 4                # row_min (lane-padded)
                + 8 * M_pad * 4               # col_min slab
                + 4 * TN * TM * 4)            # dist tile + elementwise temps
    vmem_limit = int(min(64 * 1024 * 1024, max(32 * 1024 * 1024, 2 * vmem_est)))

    flops = 2 * B * N_pad * M_pad * D_PAD + 3 * B * N_pad * M_pad
    bytes_accessed = 4 * B * (N_pad * D_PAD + D_PAD * M_pad + 2)

    loss1, loss2 = pl.pallas_call(
        kernel,
        out_shape=(
            jax.ShapeDtypeStruct((B, 1, 1), jnp.float32),
            jax.ShapeDtypeStruct((B, 1, 1), jnp.float32),
        ),
        grid_spec=pltpu.PrefetchScalarGridSpec(
            num_scalar_prefetch=0,
            grid=(B, n_tiles, m_tiles),
            in_specs=[
                pl.BlockSpec((1, TN, D_PAD), lambda b, ni, mi: (b, ni, 0)),
                # p2 resident per batch: one DMA per b, mi sliced in-kernel.
                pl.BlockSpec((1, D_PAD, M_pad), lambda b, ni, mi: (b, 0, 0)),
            ],
            out_specs=[
                pl.BlockSpec((1, 1, 1), lambda b, ni, mi: (b, 0, 0)),
                pl.BlockSpec((1, 1, 1), lambda b, ni, mi: (b, 0, 0)),
            ],
            scratch_shapes=[
                pltpu.VMEM((TN, 1), jnp.float32),        # running row-min (loss1)
                pltpu.VMEM((8, M_pad), jnp.float32),     # running col-min slab (loss2)
                pltpu.VMEM((1, 1), jnp.float32),         # loss1 accumulator
                pltpu.VMEM((1, 1), jnp.float32),         # loss2 accumulator
            ],
        ),
        compiler_params=pltpu.CompilerParams(
            dimension_semantics=("parallel", "arbitrary", "arbitrary"),
            vmem_limit_bytes=vmem_limit),
        cost_estimate=pl.CostEstimate(
            flops=flops, transcendentals=0, bytes_accessed=bytes_accessed),
    )(p1_feat, p2t)

    loss1 = loss1.reshape(B)
    loss2 = loss2.reshape(B)
    loss = w1 * loss1 + w2 * loss2
    if not each_batch:
        loss = jnp.mean(loss)
    return loss


def _reference(points1, points2, w1=1.0, w2=1.0, each_batch=False):
    diff = points1[:, :, None, :] - points2[:, None, :, :]
    dist = jnp.sum(diff * diff, axis=3)
    d1 = jnp.sqrt(dist) ** 2
    d2 = jnp.sqrt(jnp.transpose(dist, (0, 2, 1))) ** 2
    loss1 = jnp.min(d1, axis=2).mean(axis=1)
    loss2 = jnp.min(d2, axis=2).mean(axis=1)
    loss = w1 * loss1 + w2 * loss2
    if not each_batch:
        loss = jnp.mean(loss)
    return loss


if __name__ == "__main__":
    key = jax.random.PRNGKey(0)
    k1, k2 = jax.random.split(key)
    B, N, M = 2, 72, 200
    points1 = jax.random.normal(k1, (B, N, 3), dtype=jnp.float32)
    points2 = jax.random.normal(k2, (B, M, 3), dtype=jnp.float32)

    # Default (auto) tiling: single tile per batch element at these shapes,
    # exercises sentinel column padding (M=200 -> M_pad=256).
    out = chamfer_distance_loss(points1, points2, w1=1.0, w2=2.0, each_batch=False)
    out = jax.block_until_ready(out)
    ref = _reference(points1, points2, w1=1.0, w2=2.0, each_batch=False)
    assert jnp.allclose(out, ref, rtol=1e-4, atol=1e-4), (out, ref)

    # Small tiles: exercises multi-tile running-min / accumulator paths plus
    # sentinel row AND column padding (N=72 -> N_pad=80, M=200 -> M_pad=256).
    out_b = chamfer_distance_loss(points1, points2, each_batch=True,
                                  tile_n=16, tile_m=128)
    out_b = jax.block_until_ready(out_b)
    ref_b = _reference(points1, points2, each_batch=True)
    assert jnp.allclose(out_b, ref_b, rtol=1e-4, atol=1e-4), (out_b, ref_b)

    print("KERNEL_OK")
</pallas_src>

<mosaic_0001>
module attributes {stable_mosaic.version = 11 : i64} {
  func.func @_chamfer_kernel(%arg0: i32, %arg1: i32, %arg2: i32, %arg3: memref<1x72x8xf32, #tpu.memory_space<vmem>>, %arg4: memref<1x8x256xf32, #tpu.memory_space<vmem>>, %arg5: memref<1x1x1xf32, #tpu.memory_space<vmem>>, %arg6: memref<1x1x1xf32, #tpu.memory_space<vmem>>, %arg7: memref<72x1xf32, #tpu.memory_space<vmem>>, %arg8: memref<8x256xf32, #tpu.memory_space<vmem>>, %arg9: memref<1x1xf32, #tpu.memory_space<vmem>>, %arg10: memref<1x1xf32, #tpu.memory_space<vmem>>) attributes {dimension_semantics = [#tpu.dimension_semantics<parallel>, #tpu.dimension_semantics<arbitrary>, #tpu.dimension_semantics<arbitrary>], iteration_bounds = array<i64: 2, 1, 1>, scalar_prefetch = 0 : i64, scratch_operands = 4 : i64, tpu.core_type = #tpu.core_type<tc>, window_params = [{transform_indices = @transform_0, window_bounds = array<i64: 1, 72, 8>}, {transform_indices = @transform_1, window_bounds = array<i64: 1, 8, 256>}, {transform_indices = @transform_2, window_bounds = array<i64: 1, 1, 1>}, {transform_indices = @transform_3, window_bounds = array<i64: 1, 1, 1>}]} {
    %c256_i32 = arith.constant 256 : i32
    %0 = arith.muli %arg2, %c256_i32 : i32
    %1 = tpu.assume_multiple %0, 128 : i32
    %c0 = arith.constant 0 : index
    %c0_0 = arith.constant 0 : index
    %c0_1 = arith.constant 0 : index
    %2 = vector.load %arg3[%c0, %c0_0, %c0_1] : memref<1x72x8xf32, #tpu.memory_space<vmem>>, vector<1x72x8xf32>
    %3 = vector.shape_cast %2 : vector<1x72x8xf32> to vector<72x8xf32>
    %c0_2 = arith.constant 0 : index
    %c0_3 = arith.constant 0 : index
    %4 = arith.index_cast %1 : i32 to index
    %5 = vector.load %arg4[%c0_2, %c0_3, %4] : memref<1x8x256xf32, #tpu.memory_space<vmem>>, vector<1x8x256xf32>
    %6 = vector.shape_cast %5 : vector<1x8x256xf32> to vector<8x256xf32>
    %cst = arith.constant dense<0.000000e+00> : vector<72x256xf32>
    %7 = tpu.matmul %3, %6, %cst {dimension_numbers = #tpu.dot_dimension_numbers<[1], [0], [0], [1], [0, 0, 1, 1], [], []>} : vector<72x8xf32>, vector<8x256xf32>, vector<72x256xf32> -> vector<72x256xf32>
    %cst_4 = arith.constant 0.000000e+00 : f32
    %8 = vector.broadcast %cst_4 : f32 to vector<72x256xf32>
    %9 = arith.maximumf %7, %8 : vector<72x256xf32>
    %c0_i32 = arith.constant 0 : i32
    %10 = arith.cmpi eq, %arg1, %c0_i32 : i32
    %c0_i32_5 = arith.constant 0 : i32
    %11 = arith.cmpi eq, %arg2, %c0_i32_5 : i32
    %12 = arith.andi %10, %11 : i1
    %13 = arith.extui %12 : i1 to i32
    %c0_i32_6 = arith.constant 0 : i32
    %14 = arith.cmpi ne, %13, %c0_i32_6 : i32
    scf.if %14 {
      %cst_24 = arith.constant 0.000000e+00 : f32
      %42 = vector.broadcast %cst_24 : f32 to vector<1x1xf32>
      %c0_25 = arith.constant 0 : index
      %c0_26 = arith.constant 0 : index
      %43 = vector.load %arg9[%c0_25, %c0_26] : memref<1x1xf32, #tpu.memory_space<vmem>>, vector<1x1xf32>
      tpu.vector_store %arg9[%c0_25, %c0_26], %42 {strides = array<i32>} : memref<1x1xf32, #tpu.memory_space<vmem>>, vector<1x1xf32>,
      %cst_27 = arith.constant 0.000000e+00 : f32
      %44 = vector.broadcast %cst_27 : f32 to vector<1x1xf32>
      %c0_28 = arith.constant 0 : index
      %c0_29 = arith.constant 0 : index
      %45 = vector.load %arg10[%c0_28, %c0_29] : memref<1x1xf32, #tpu.memory_space<vmem>>, vector<1x1xf32>
      tpu.vector_store %arg10[%c0_28, %c0_29], %44 {strides = array<i32>} : memref<1x1xf32, #tpu.memory_space<vmem>>, vector<1x1xf32>,
    } else {
    }
    %cst_7 = arith.constant dense<0x7F800000> : vector<72xf32>
    %15 = vector.multi_reduction <minimumf>, %9, %cst_7 [1] : vector<72x256xf32> to vector<72xf32>
    %16 = vector.shape_cast %15 : vector<72xf32> to vector<72x1xf32>
    %cst_8 = arith.constant dense<0x7F800000> : vector<256xf32>
    %17 = vector.multi_reduction <minimumf>, %9, %cst_8 [0] : vector<72x256xf32> to vector<256xf32>
    %18 = vector.shape_cast %17 : vector<256xf32> to vector<1x256xf32>
    %c0_i32_9 = arith.constant 0 : i32
    %19 = arith.cmpi eq, %arg2, %c0_i32_9 : i32
    %20 = arith.extui %19 : i1 to i32
    %c0_i32_10 = arith.constant 0 : i32
    %21 = arith.cmpi ne, %20, %c0_i32_10 : i32
    scf.if %21 {
      %c0_24 = arith.constant 0 : index
      %c0_25 = arith.constant 0 : index
      %42 = vector.load %arg7[%c0_24, %c0_25] : memref<72x1xf32, #tpu.memory_space<vmem>>, vector<72x1xf32>
      tpu.vector_store %arg7[%c0_24, %c0_25], %16 {strides = array<i32>} : memref<72x1xf32, #tpu.memory_space<vmem>>, vector<72x1xf32>,
    } else {
    }
    %c0_i32_11 = arith.constant 0 : i32
    %22 = arith.cmpi sgt, %arg2, %c0_i32_11 : i32
    %23 = arith.extui %22 : i1 to i32
    %c0_i32_12 = arith.constant 0 : i32
    %24 = arith.cmpi ne, %23, %c0_i32_12 : i32
    scf.if %24 {
      %c0_24 = arith.constant 0 : index
      %c0_25 = arith.constant 0 : index
      %42 = vector.load %arg7[%c0_24, %c0_25] : memref<72x1xf32, #tpu.memory_space<vmem>>, vector<72x1xf32>
      %43 = arith.minimumf %42, %16 : vector<72x1xf32>
      %c0_26 = arith.constant 0 : index
      %c0_27 = arith.constant 0 : index
      %44 = vector.load %arg7[%c0_26, %c0_27] : memref<72x1xf32, #tpu.memory_space<vmem>>, vector<72x1xf32>
      tpu.vector_store %arg7[%c0_26, %c0_27], %43 {strides = array<i32>} : memref<72x1xf32, #tpu.memory_space<vmem>>, vector<72x1xf32>,
    } else {
    }
    %c0_i32_13 = arith.constant 0 : i32
    %25 = arith.cmpi eq, %arg1, %c0_i32_13 : i32
    %26 = arith.extui %25 : i1 to i32
    %c0_i32_14 = arith.constant 0 : i32
    %27 = arith.cmpi ne, %26, %c0_i32_14 : i32
    scf.if %27 {
      %c0_24 = arith.constant 0 : index
      %42 = arith.index_cast %1 : i32 to index
      %43 = vector.load %arg8[%c0_24, %42] : memref<8x256xf32, #tpu.memory_space<vmem>>, vector<1x256xf32>
      tpu.vector_store %arg8[%c0_24, %42], %18 {strides = array<i32>} : memref<8x256xf32, #tpu.memory_space<vmem>>, vector<1x256xf32>,
    } else {
    }
    %c0_i32_15 = arith.constant 0 : i32
    %28 = arith.cmpi sgt, %arg1, %c0_i32_15 : i32
    %29 = arith.extui %28 : i1 to i32
    %c0_i32_16 = arith.constant 0 : i32
    %30 = arith.cmpi ne, %29, %c0_i32_16 : i32
    scf.if %30 {
      %c0_24 = arith.constant 0 : index
      %42 = arith.index_cast %1 : i32 to index
      %43 = vector.load %arg8[%c0_24, %42] : memref<8x256xf32, #tpu.memory_space<vmem>>, vector<1x256xf32>
      %44 = arith.minimumf %43, %18 : vector<1x256xf32>
      %c0_25 = arith.constant 0 : index
      %45 = arith.index_cast %1 : i32 to index
      %46 = vector.load %arg8[%c0_25, %45] : memref<8x256xf32, #tpu.memory_space<vmem>>, vector<1x256xf32>
      tpu.vector_store %arg8[%c0_25, %45], %44 {strides = array<i32>} : memref<8x256xf32, #tpu.memory_space<vmem>>, vector<1x256xf32>,
    } else {
    }
    %c0_i32_17 = arith.constant 0 : i32
    %31 = arith.cmpi eq, %arg2, %c0_i32_17 : i32
    %32 = arith.extui %31 : i1 to i32
    %c0_i32_18 = arith.constant 0 : i32
    %33 = arith.cmpi ne, %32, %c0_i32_18 : i32
    scf.if %33 {
      %c0_24 = arith.constant 0 : index
      %c0_25 = arith.constant 0 : index
      %42 = vector.load %arg7[%c0_24, %c0_25] : memref<72x1xf32, #tpu.memory_space<vmem>>, vector<72x1xf32>
      %c0_26 = arith.constant 0 : index
      %c0_27 = arith.constant 0 : index
      %43 = vector.load %arg9[%c0_26, %c0_27] : memref<1x1xf32, #tpu.memory_space<vmem>>, vector<1x1xf32>
      %44 = vector.shape_cast %42 : vector<72x1xf32> to vector<1x72x1xf32>
      %cst_28 = arith.constant dense<0.000000e+00> : vector<1xf32>
      %45 = vector.multi_reduction <add>, %44, %cst_28 [1, 2] : vector<1x72x1xf32> to vector<1xf32>
      %46 = vector.shape_cast %45 : vector<1xf32> to vector<1x1x1xf32>
      %47 = vector.extract %46[0, 0, 0] : f32 from vector<1x1x1xf32>
      %48 = vector.broadcast %47 : f32 to vector<1x1xf32>
      %49 = arith.addf %43, %48 : vector<1x1xf32>
      %c0_29 = arith.constant 0 : index
      %c0_30 = arith.constant 0 : index
      %50 = vector.load %arg9[%c0_29, %c0_30] : memref<1x1xf32, #tpu.memory_space<vmem>>, vector<1x1xf32>
      tpu.vector_store %arg9[%c0_29, %c0_30], %49 {strides = array<i32>} : memref<1x1xf32, #tpu.memory_space<vmem>>, vector<1x1xf32>,
    } else {
    }
    %c0_i32_19 = arith.constant 0 : i32
    %34 = arith.cmpi eq, %arg1, %c0_i32_19 : i32
    %35 = arith.extui %34 : i1 to i32
    %c0_i32_20 = arith.constant 0 : i32
    %36 = arith.cmpi ne, %35, %c0_i32_20 : i32
    scf.if %36 {
      %c0_24 = arith.constant 0 : index
      %42 = arith.index_cast %1 : i32 to index
      %43 = vector.load %arg8[%c0_24, %42] : memref<8x256xf32, #tpu.memory_space<vmem>>, vector<1x256xf32>
      %44 = tpu.iota {dimensions = array<i32: 1>} : vector<1x256xi32>
      %45 = vector.broadcast %1 : i32 to vector<1x256xi32>
      %46 = arith.addi %45, %44 : vector<1x256xi32>
      %c200_i32 = arith.constant 200 : i32
      %47 = vector.broadcast %c200_i32 : i32 to vector<1x256xi32>
      %48 = arith.cmpi slt, %46, %47 : vector<1x256xi32>
      %cst_25 = arith.constant 0.000000e+00 : f32
      %49 = vector.broadcast %cst_25 : f32 to vector<1x256xf32>
      %50 = arith.select %48, %43, %49 : vector<1x256xi1>, vector<1x256xf32>
      %c0_26 = arith.constant 0 : index
      %c0_27 = arith.constant 0 : index
      %51 = vector.load %arg10[%c0_26, %c0_27] : memref<1x1xf32, #tpu.memory_space<vmem>>, vector<1x1xf32>
      %52 = vector.shape_cast %50 : vector<1x256xf32> to vector<1x1x256xf32>
      %cst_28 = arith.constant dense<0.000000e+00> : vector<1xf32>
      %53 = vector.multi_reduction <add>, %52, %cst_28 [1, 2] : vector<1x1x256xf32> to vector<1xf32>
      %54 = vector.shape_cast %53 : vector<1xf32> to vector<1x1x1xf32>
      %55 = vector.extract %54[0, 0, 0] : f32 from vector<1x1x1xf32>
      %56 = vector.broadcast %55 : f32 to vector<1x1xf32>
      %57 = arith.addf %51, %56 : vector<1x1xf32>
      %c0_29 = arith.constant 0 : index
      %c0_30 = arith.constant 0 : index
      %58 = vector.load %arg10[%c0_29, %c0_30] : memref<1x1xf32, #tpu.memory_space<vmem>>, vector<1x1xf32>
      tpu.vector_store %arg10[%c0_29, %c0_30], %57 {strides = array<i32>} : memref<1x1xf32, #tpu.memory_space<vmem>>, vector<1x1xf32>,
    } else {
    }
    %c0_i32_21 = arith.constant 0 : i32
    %37 = arith.cmpi eq, %arg1, %c0_i32_21 : i32
    %c0_i32_22 = arith.constant 0 : i32
    %38 = arith.cmpi eq, %arg2, %c0_i32_22 : i32
    %39 = arith.andi %37, %38 : i1
    %40 = arith.extui %39 : i1 to i32
    %c0_i32_23 = arith.constant 0 : i32
    %41 = arith.cmpi ne, %40, %c0_i32_23 : i32
    scf.if %41 {
      %c0_24 = arith.constant 0 : index
      %c0_25 = arith.constant 0 : index
      %42 = vector.load %arg9[%c0_24, %c0_25] : memref<1x1xf32, #tpu.memory_space<vmem>>, vector<1x1xf32>
      %cst_26 = arith.constant 0.013888889 : f32
      %43 = vector.broadcast %cst_26 : f32 to vector<1x1xf32>
      %44 = arith.mulf %42, %43 : vector<1x1xf32>
      %45 = vector.shape_cast %44 : vector<1x1xf32> to vector<1x1x1xf32>
      %c0_27 = arith.constant 0 : index
      %c0_28 = arith.constant 0 : index
      %c0_29 = arith.constant 0 : index
      %46 = vector.load %arg5[%c0_27, %c0_28, %c0_29] : memref<1x1x1xf32, #tpu.memory_space<vmem>>, vector<1x1x1xf32>
      tpu.vector_store %arg5[%c0_27, %c0_28, %c0_29], %45 {strides = array<i32>} : memref<1x1x1xf32, #tpu.memory_space<vmem>>, vector<1x1x1xf32>,
      %c0_30 = arith.constant 0 : index
      %c0_31 = arith.constant 0 : index
      %47 = vector.load %arg10[%c0_30, %c0_31] : memref<1x1xf32, #tpu.memory_space<vmem>>, vector<1x1xf32>
      %cst_32 = arith.constant 5.000000e-03 : f32
      %48 = vector.broadcast %cst_32 : f32 to vector<1x1xf32>
      %49 = arith.mulf %47, %48 : vector<1x1xf32>
      %50 = vector.shape_cast %49 : vector<1x1xf32> to vector<1x1x1xf32>
      %c0_33 = arith.constant 0 : index
      %c0_34 = arith.constant 0 : index
      %c0_35 = arith.constant 0 : index
      %51 = vector.load %arg6[%c0_33, %c0_34, %c0_35] : memref<1x1x1xf32, #tpu.memory_space<vmem>>, vector<1x1x1xf32>
      tpu.vector_store %arg6[%c0_33, %c0_34, %c0_35], %50 {strides = array<i32>} : memref<1x1x1xf32, #tpu.memory_space<vmem>>, vector<1x1x1xf32>,
    } else {
    }
    return
  }
  func.func @transform_0(%arg0: i32, %arg1: i32, %arg2: i32) -> (i32, i32, i32) {
    %c0_i32 = arith.constant 0 : i32
    %c0_i32_0 = arith.constant 0 : i32
    return %arg0, %arg1, %c0_i32 : i32, i32, i32
  }
  func.func @transform_1(%arg0: i32, %arg1: i32, %arg2: i32) -> (i32, i32, i32) {
    %c0_i32 = arith.constant 0 : i32
    %c0_i32_0 = arith.constant 0 : i32
    %c0_i32_1 = arith.constant 0 : i32
    return %arg0, %c0_i32, %c0_i32_0 : i32, i32, i32
  }
  func.func @transform_2(%arg0: i32, %arg1: i32, %arg2: i32) -> (i32, i32, i32) {
    %c0_i32 = arith.constant 0 : i32
    %c0_i32_0 = arith.constant 0 : i32
    %c0_i32_1 = arith.constant 0 : i32
    return %arg0, %c0_i32, %c0_i32_0 : i32, i32, i32
  }
  func.func @transform_3(%arg0: i32, %arg1: i32, %arg2: i32) -> (i32, i32, i32) {
    %c0_i32 = arith.constant 0 : i32
    %c0_i32_0 = arith.constant 0 : i32
    %c0_i32_1 = arith.constant 0 : i32
    return %arg0, %c0_i32, %c0_i32_0 : i32, i32, i32
  }
}

</mosaic_0001>

<bundles_post_ra>
// kernel: tpu_custom_call.1
= control target key start
LH: loop header
LB: loop body
LE: loop exit
PB: predicated region body
PF: predicated region fallthrough
CT: control target
= control target key end

     0   :  { %s888_s12 = smov 0   ;;  %s890_s13 = smov 0   ;;  %s988_s0 = inlined_call_operand.vmem [shape: f32[2,72,8], index: 0, kind: input, shape index: {}]   ;;  %s989_s1 = inlined_call_operand.vmem [shape: f32[2,8,256], index: 1, kind: input, shape index: {}]   ;;  %s990_s2 = inlined_call_operand.vmem [shape: f32[2,1,1], index: 2, kind: output, shape index: {0}]   ;;  %s991_s3 = inlined_call_operand.vmem [shape: f32[2,1,1], index: 3, kind: output, shape index: {1}]  }
   0x1   :  { %s892_s14 = smov 0  }
   0x2 LB: > { %s33_s15 = sadd.s32 1, %s860_s13  ;;  %p793_p0 = scmp.ge.s32.totalorder %s864_s14, 1  ;;  %s864_s14 = sphi %s892_s14, %s14_s14   ;;  %s860_s13 = sphi %s890_s13, %s993_s13   ;;  %s856_s12 = sphi %s888_s12, %s992_s12  }
   0x3   : > { %p35_p1 = scmp.ge.s32.totalorder %s33_s15, 2  ;;  %p176_p2 = scmp.lt.s32.totalorder %s864_s14, 3 }
   0x5   : > { %s995_s15 = smov (%p35_p1, %s33_s15), 0  ;;  %p177_p3 = pnand %p793_p0, %p176_p2 }
   0x6   : > { %p211_p4 = scmp.lt.s32.totalorder (!%p177_p3), %s856_s12, 1  ;;  %v866_v0 = vmov (!%p177_p3), 0.0   ;;  %vm247_vm0 = vcmask (!%p177_p3), 64512   ;;  %vm654_vm3 = vcmask (!%p177_p3), 1040384   ;;  %vm479_vm4 = vcmask (!%p177_p3), 7168  }
   0x7   : > { %180 = sbr.rel (%p177_p3) target bundleno = 633 (0x279), region = 28  ;;  %339 = vmatprep.mubr.f32.mxu0 (!%p177_p3), %v866_v0  ;;  %369 = vmatprep.mubr.f32.mxu1 (!%p177_p3), %v866_v0  ;;  %vm418_vm5 = vcmask (!%p177_p3), 0  }
   0x8   : > { %419 = vst.msk [vmem:[#allocation4] sm:$0x1] (!%p177_p3), %vm418_vm5, %v866_v0  ;;  %420 = vst.msk [vmem:[#allocation5] sm:$0x1] (!%p177_p3), %vm418_vm5, %v866_v0 }
   0xe   : > { %s997_s12 = smov (!%p211_p4, %s856_s12), 1 }
   0xf   : > { %s811_s16 = smul.u32 72, %s997_s12  ;;  %s808_s17 = sshll.u32 %s997_s12, 4 }
  0x10   : > { %s224_s20 = scalar_lea.vmem %s989_s1, %s808_s17  ;;  %s227_s28 = scalar_lea.vmem %s990_s2, %s997_s12 }
  0x11   : > { %s918_s23 = scalar_lea.vmem %s988_s0, %s811_s16  ;;  %v246_v1 = vld [vmem:[%s224_s20 + $0x8] sm:$0xff]  ;;  %v245_v2 = vld [vmem:[%s224_s20] sm:$0xff]  ;;  %s230_s4 = scalar_lea.vmem %s991_s3, %s997_s12 }
  0x12   : > { %275 = vmatprep.subr.mxu0 %v246_v1  ;;  %v232_v3 = vld [vmem:[%s918_s23] sm:$0xff]  ;;  %809 = vmatprep.subr.mxu1 %v246_v1  ;;  %v237_v4 = vld [vmem:[%s918_s23 + $0x28] sm:$0xff]  ;;  %v238_v6 = vld [vmem:[%s918_s23 + $0x30] sm:$0xff] }
  0x13   : > { %276 = vmatpush1.msra.mxu0 %v245_v2  ;;  %810 = vmatpush1.msra.mxu1 %v245_v2  ;;  %v233_v5 = vld [vmem:[%s918_s23 + $0x8] sm:$0xff]  ;;  %v234_v7 = vld [vmem:[%s918_s23 + $0x10] sm:$0xff]  ;;  %v239_v8 = vld [vmem:[%s918_s23 + $0x38] sm:$0xff] }
  0x14   : > { %797 = vmatmul.mubr.msk.f32.vlgmr.msra.gmra.mrb[0].mxu0 %vm247_vm0, %v232_v3  ;;  %802 = vmatmul.mubr.msk.f32.vlgmr.msra.gmra.mrb[0].mxu1 %vm247_vm0, %v237_v4  ;;  %v235_v9 = vld [vmem:[%s918_s23 + $0x18] sm:$0xff]  ;;  %v240_v10 = vld [vmem:[%s918_s23 + $0x40] sm:$0xff] }
  0x15   : > { %345 = vmatprep.mubr.f32.mxu0 %v866_v0  ;;  %375 = vmatprep.mubr.f32.mxu1 %v866_v0  ;;  %v236_v11 = vld [vmem:[%s918_s23 + $0x20] sm:$0xff] }
  0x18   : > { %798 = vmatmul.mubr.msk.f32.gmra.mrb[2].mxu0 %vm247_vm0, %v233_v5  ;;  %803 = vmatmul.mubr.msk.f32.gmra.mrb[2].mxu1 %vm247_vm0, %v238_v6 }
  0x19   : > { %351 = vmatprep.mubr.f32.mxu0 %v866_v0  ;;  %381 = vmatprep.mubr.f32.mxu1 %v866_v0 }
  0x1c   : > { %799 = vmatmul.mubr.msk.f32.gmra.mrb[4].mxu0 %vm247_vm0, %v234_v7  ;;  %804 = vmatmul.mubr.msk.f32.gmra.mrb[4].mxu1 %vm247_vm0, %v239_v8 }
  0x1d   : > { %357 = vmatprep.mubr.f32.mxu0 %v866_v0  ;;  %387 = vmatprep.mubr.f32.mxu1 %v866_v0 }
  0x20   : > { %800 = vmatmul.mubr.msk.f32.gmra.mrb[6].mxu0 %vm247_vm0, %v235_v9  ;;  %805 = vmatmul.mubr.msk.f32.gmra.mrb[6].mxu1 %vm247_vm0, %v240_v10 }
  0x21   : > { %363 = vmatprep.mubr.f32.mxu0 %v866_v0  ;;  %v653_v0 = vld [vmem:[#allocation5] sm:$0x1] }
  0x24   : > { %801 = vmatmul.mubr.msk.f32.gmra.mrb[8].mxu0 %vm247_vm0, %v236_v11 }
  0xe7   : > { %v341_v12 = vpop.f32.mrb[0].mxu0  ;;  %v371_v13 = vpop.f32.mrb[0].mxu1 }
  0xe8   : > { %v394_v14 = vmax.f32 %v341_v12, 0.0  ;;  %v343_v15 = vpop.f32.mrb[1].mxu0  ;;  %v404_v16 = vmax.f32 %v371_v13, 0.0  ;;  %v373_v17 = vpop.f32.mrb[1].mxu1 }
  0xe9   : > { %v395_v18 = vmax.f32 %v343_v15, 0.0  ;;  %v405_v19 = vmax.f32 %v373_v17, 0.0 }
  0xeb   : > { %v347_v20 = vpop.f32.mrb[2].mxu0  ;;  %v421_v21 = vmin.f32 %v394_v14, %v395_v18  ;;  %v377_v22 = vpop.f32.mrb[2].mxu1  ;;  %v436_v23 = vmin.f32 %v404_v16, %v405_v19 }
  0xec   : > { %v396_v24 = vmax.f32 %v347_v20, 0.0  ;;  %v349_v25 = vpop.f32.mrb[3].mxu0  ;;  %v406_v26 = vmax.f32 %v377_v22, 0.0  ;;  %v379_v27 = vpop.f32.mrb[3].mxu1 }
  0xed   : > { %v397_v28 = vmax.f32 %v349_v25, 0.0  ;;  %422 = vmin.xlane.f32.xlu0 %v421_v21  ;;  %v407_v29 = vmax.f32 %v379_v27, 0.0 }
  0xef   : > { %v353_v30 = vpop.f32.mrb[4].mxu0  ;;  %v424_v31 = vmin.f32 %v396_v24, %v397_v28  ;;  %v383_v32 = vpop.f32.mrb[4].mxu1  ;;  %v439_v33 = vmin.f32 %v406_v26, %v407_v29 }
  0xf0   : > { %v398_v34 = vmax.f32 %v353_v30, 0.0  ;;  %v355_v35 = vpop.f32.mrb[5].mxu0  ;;  %v385_v36 = vpop.f32.mrb[5].mxu1  ;;  %v408_v38 = vmax.f32 %v383_v32, 0.0 }
  0xf1   : > { %v399_v37 = vmax.f32 %v355_v35, 0.0  ;;  %425 = vmin.xlane.f32.xlu0 %v424_v31  ;;  %v409_v39 = vmax.f32 %v385_v36, 0.0 }
  0xf2   : > { %v448_v40 = vmin.f32 %v394_v14, %v398_v34  ;;  %v867_v14 = vmov 1966171168  }
  0xf3   : > { %v462_v41 = vmin.f32 %v395_v18, %v399_v37  ;;  %v359_v42 = vpop.f32.mrb[6].mxu0  ;;  %v427_v43 = vmin.f32 %v398_v34, %v399_v37  ;;  %v389_v44 = vpop.f32.mrb[6].mxu1  ;;  %v442_v45 = vmin.f32 %v408_v38, %v409_v39  ;;  %v528_v15 = vunpack.c.l.s4 %v867_v14 }
  0xf4   : > { %v400_v46 = vmax.f32 %v359_v42, 0.0  ;;  %v361_v47 = vpop.f32.mrb[7].mxu0  ;;  %v391_v48 = vpop.f32.mrb[7].mxu1  ;;  %v410_v50 = vmax.f32 %v389_v44, 0.0 }
  0xf5   : > { %v401_v49 = vmax.f32 %v361_v47, 0.0  ;;  %428 = vmin.xlane.f32.xlu1 %v427_v43  ;;  %v411_v51 = vmax.f32 %v391_v48, 0.0  ;;  %v529_v21 = vunpack.c.0.s8 %v528_v15 }
  0xf6   : > { %v449_v52 = vmin.f32 %v396_v24, %v400_v46 }
  0xf7   : > { %v463_v53 = vmin.f32 %v397_v28, %v401_v49  ;;  %v365_v54 = vpop.f32.mrb[8].mxu0  ;;  %v430_v55 = vmin.f32 %v400_v46, %v401_v49  ;;  %v445_v56 = vmin.f32 %v410_v50, %v411_v51 }
  0xf8   : > { %v402_v57 = vmax.f32 %v365_v54, 0.0  ;;  %v451_v58 = vmin.f32 %v449_v52, %v404_v16  ;;  %v367_v59 = vpop.f32.mrb[9].mxu0  ;;  %v530_v16 = vlaneseq }
  0xf9   : > { %v403_v60 = vmax.f32 %v367_v59, 0.0  ;;  %v465_v61 = vmin.f32 %v463_v53, %v405_v19  ;;  %431 = vmin.xlane.f32.xlu1 %v430_v55 }
  0xfa   : > { %v450_v62 = vmin.f32 %v448_v40, %v402_v57  ;;  %v453_v63 = vmin.f32 %v451_v58, %v408_v38  ;;  %v531_v22 = vshrl.u32 %v530_v16, 7  ;;  %vm546_vm1 = vcmp.lt.s32.totalorder %v530_v16, 256 }
  0xfb   : > { %v464_v1 = vmin.f32 %v462_v41, %v403_v60  ;;  %v467_v2 = vmin.f32 %v465_v61, %v409_v39  ;;  %v433_v3 = vmin.f32 %v402_v57, %v403_v60  ;;  %v633_v31 = vand.u32 127, %v530_v16 }
  0xfc   : > { %v452_v4 = vmin.f32 %v450_v62, %v406_v26  ;;  %v532_v27 = vsub.s32 %v529_v21, %v531_v22  ;;  %v647_v34 = vsub.s32 1, %v531_v22 }
  0xfd   : > { %v466_v5 = vmin.f32 %v464_v1, %v407_v29  ;;  %437 = vmin.xlane.f32.xlu1 %v436_v23  ;;  %434 = vmin.xlane.f32.xlu0 %v433_v3  ;;  %v634_v32 = vadd.s32 128, %v633_v31 }
  0xfe   : > { %v454_v6 = vmin.f32 %v452_v4, %v410_v50 }
  0xff   : > { %v468_v7 = vmin.f32 %v466_v5, %v411_v51  ;;  %vm639_vm2 = vcmp.lt.s32.totalorder %v634_v32, 200 }
 0x100   : > { %v455_v8 = vmin.f32 %v454_v6, %v453_v63 }
 0x101   : > { %v469_v9 = vmin.f32 %v468_v7, %v467_v2  ;;  %443 = vmin.xlane.f32.xlu1 %v442_v45  ;;  %440 = vmin.xlane.f32.xlu0 %v439_v33  ;;  %v643_v33 = vsub.s32 0, %v531_v22 }
 0x102   : > { %v456_v10 = vrot.slane %v455_v8, 4 }
 0x103   : > { %v470_v11 = vrot.slane %v469_v9, 4 }
 0x104   : > { %v457_v12 = vmin.f32 %v455_v8, %v456_v10 }
 0x105   : > { %v471_v13 = vmin.f32 %v469_v9, %v470_v11  ;;  %446 = vmin.xlane.f32.xlu0 %v445_v56 }
 0x106   : > { %v458_v17 = vrot.slane %v457_v12, 2 }
 0x107   : > { %v472_v18 = vrot.slane %v471_v13, 2 }
 0x108   : > { %v459_v19 = vmin.f32 %v457_v12, %v458_v17 }
 0x109   : > { %v473_v20 = vmin.f32 %v471_v13, %v472_v18 }
 0x10a   : > { %v460_v23 = vrot.slane %v459_v19, 1 }
 0x10b   : > { %v474_v24 = vrot.slane %v473_v20, 1 }
 0x10c   : > { %v461_v25 = vmin.f32 %v459_v19, %v460_v23 }
 0x10d   : > { %v475_v26 = vmin.f32 %v473_v20, %v474_v24 }
 0x10f   : > { %v526_v28 = vcombine.low %v461_v25, %v475_v26 }
 0x111   : > { %v533_v29 = vrot.slane %v526_v28, %v532_v27  ;;  %v594_v28 = vld [vmem:[#allocation4] sm:$0x1] }
 0x113   : > { %v540_v30 = vrot.slane %v533_v29, %v532_v27 }
 0x115   : > { %548 = vst.msk [vmem:[#allocation3] ss:$8 sm:$0x3] %vm546_vm1, %v540_v30 }
 0x11c   : > { %v631_v35 = vld [vmem:[#allocation3] ss:$8 sm:$0x3] }
 0x11d   : > { %v644_v36 = vrot.slane %v631_v35, %v643_v33  ;;  %v648_v37 = vrot.slane %v631_v35, %v647_v34 }
 0x11f   : > { %v652_v38 = vsel %vm639_vm2, %v648_v37, 0.0  ;;  %v655_v39 = vsel %vm654_vm3, %v644_v36, 0.0 }
 0x120   : > { %v656_v40 = vsel %vm654_vm3, %v652_v38, 0.0 }
 0x121   : > { %v657_v41 = vadd.f32 %v656_v40, %v655_v39 }
 0x123   : > { %658 = vadd.xlane.f32.xlu0 %v657_v41 }
 0x17a   : > { %v423_v42 = vpop.xlane.xlu0 %422 }
 0x17b   : > { %480 = vst.msk [vmem:[#allocation2] sm:$0xff] %vm479_vm4, %v423_v42 }
 0x17e   : > { %v426_v43 = vpop.xlane.xlu0 %425 }
 0x17f   : > { %481 = vst.msk [vmem:[#allocation2 + $0x8] sm:$0xff] %vm479_vm4, %v426_v43 }
 0x182   : > { %v429_v44 = vpop.xlane.xlu1 %428  ;;  %v585_v49 = vld [vmem:[#allocation2] sm:$0xff] }
 0x183   : > { %482 = vst.msk [vmem:[#allocation2 + $0x10] sm:$0xff] %vm479_vm4, %v429_v44  ;;  %v596_v52 = vsel %vm479_vm4, %v585_v49, 0.0 }
 0x186   : > { %v432_v45 = vpop.xlane.xlu1 %431  ;;  %v586_v46 = vld [vmem:[#allocation2 + $0x8] sm:$0xff] }
 0x187   : > { %483 = vst.msk [vmem:[#allocation2 + $0x18] sm:$0xff] %vm479_vm4, %v432_v45  ;;  %v597_v51 = vsel %vm479_vm4, %v586_v46, 0.0 }
 0x188   : > { %v598_v57 = vadd.f32 %v597_v51, %v596_v52 }
 0x18a   : > { %v438_v47 = vpop.xlane.xlu1 %437  ;;  %v435_v48 = vpop.xlane.xlu0 %434  ;;  %v587_v50 = vld [vmem:[#allocation2 + $0x10] sm:$0xff] }
 0x18b   : > { %485 = vst.msk [vmem:[#allocation2 + $0x28] sm:$0xff] %vm479_vm4, %v438_v47  ;;  %484 = vst.msk [vmem:[#allocation2 + $0x20] sm:$0xff] %vm479_vm4, %v435_v48  ;;  %v599_v53 = vsel %vm479_vm4, %v587_v50, 0.0 }
 0x18c   : > { %v600_v59 = vadd.f32 %v599_v53, %v598_v57 }
 0x18e   : > { %v444_v54 = vpop.xlane.xlu1 %443  ;;  %v441_v55 = vpop.xlane.xlu0 %440  ;;  %v588_v56 = vld [vmem:[#allocation2 + $0x18] sm:$0xff] }
 0x18f   : > { %487 = vst.msk [vmem:[#allocation2 + $0x38] sm:$0xff] %vm479_vm4, %v444_v54  ;;  %486 = vst.msk [vmem:[#allocation2 + $0x30] sm:$0xff] %vm479_vm4, %v441_v55  ;;  %v601_v58 = vsel %vm479_vm4, %v588_v56, 0.0 }
 0x190   : > { %v602_v63 = vadd.f32 %v601_v58, %v600_v59 }
 0x192   : > { %v447_v60 = vpop.xlane.xlu0 %446  ;;  %v589_v61 = vld [vmem:[#allocation2 + $0x20] sm:$0xff]  ;;  %v590_v62 = vld [vmem:[#allocation2 + $0x28] sm:$0xff] }
 0x193   : > { %488 = vst.msk [vmem:[#allocation2 + $0x40] sm:$0xff] %vm479_vm4, %v447_v60  ;;  %v603_v1 = vsel %vm479_vm4, %v589_v61, 0.0  ;;  %v605_v3 = vsel %vm479_vm4, %v590_v62, 0.0 }
 0x194   : > { %v604_v2 = vadd.f32 %v603_v1, %v602_v63 }
 0x196   : > { %v591_v4 = vld [vmem:[#allocation2 + $0x30] sm:$0xff]  ;;  %v592_v5 = vld [vmem:[#allocation2 + $0x38] sm:$0xff]  ;;  %v606_v6 = vadd.f32 %v605_v3, %v604_v2 }
 0x197   : > { %v607_v7 = vsel %vm479_vm4, %v591_v4, 0.0  ;;  %v609_v9 = vsel %vm479_vm4, %v592_v5, 0.0 }
 0x198   : > { %v608_v8 = vadd.f32 %v607_v7, %v606_v6 }
 0x19a   : > { %v593_v10 = vld [vmem:[#allocation2 + $0x40] sm:$0xff]  ;;  %v610_v11 = vadd.f32 %v609_v9, %v608_v8 }
 0x19b   : > { %v611_v12 = vsel %vm479_vm4, %v593_v10, 0.0 }
 0x19c   : > { %v612_v13 = vadd.f32 %v611_v12, %v610_v11 }
 0x19e   : > { %613 = vadd.xlane.f32.xlu1 %v612_v13 }
 0x1b0   : > { %v659_v14 = vpop.xlane.xlu0 %658 }
 0x1b1   : > { %v660_v15 = vrot.slane %v659_v14, 4 }
 0x1b3   : > { %v661_v16 = vadd.f32 %v660_v15, %v659_v14 }
 0x1b5   : > { %v662_v17 = vrot.slane %v661_v16, 2 }
 0x1b7   : > { %v663_v21 = vadd.f32 %v662_v17, %v661_v16 }
 0x1b9   : > { %v664_v24 = vrot.slane %v663_v21, 1 }
 0x1bb   : > { %v665_v27 = vadd.f32 %v664_v24, %v663_v21 }
 0x22b   : > { %v614_v18 = vpop.xlane.xlu1 %613 }
 0x22c   : > { %v615_v19 = vrot.slane %v614_v18, 4 }
 0x22e   : > { %v616_v20 = vadd.f32 %v615_v19, %v614_v18 }
 0x230   : > { %v617_v22 = vrot.slane %v616_v20, 2 }
 0x232   : > { %v618_v23 = vadd.f32 %v617_v22, %v616_v20 }
 0x234   : > { %v619_v25 = vrot.slane %v618_v23, 1 }
 0x236   : > { %v620_v26 = vadd.f32 %v619_v25, %v618_v23 }
 0x238   : > { %812 = vpush %v620_v26 }
 0x239   : > { %814 = vpush %v665_v27 }
 0x269   : > { %s813_s24 = spop %812 }
 0x26a   : > { %v622_v29 = vstv %s813_s24  ;;  %s815_s25 = spop %814 }
 0x26b   : > { %v623_v30 = vadd.f32 %v622_v29, %v594_v28  ;;  %v667_v31 = vstv %s815_s25 }
 0x26c   : > { %v668_v32 = vadd.f32 %v667_v31, %v653_v0 }
 0x26d   : > { %625 = vst.msk [vmem:[#allocation4] sm:$0x1] %vm418_vm5, %v623_v30 }
 0x26e   : > { %670 = vst.msk [vmem:[#allocation5] sm:$0x1] %vm418_vm5, %v668_v32 }
 0x274   : > { %v673_v33 = vld [vmem:[#allocation4] sm:$0x1] }
 0x275   : > { %v674_v34 = vmul.f32 0.013888889, %v673_v33  ;;  %v677_v35 = vld [vmem:[#allocation5] sm:$0x1] }
 0x276   : > { %v678_v36 = vmul.f32 0.005, %v677_v35 }
 0x277   : > { %676 = vst.msk [vmem:[%s227_s28] sm:$0x1] %vm418_vm5, %v674_v34 }
 0x278   : > { %679 = vst.msk [vmem:[%s230_s4] sm:$0x1] %vm418_vm5, %v678_v36 }
 0x279 PF: > { %s14_s14 = sadd.s32 1, %s864_s14   ;;  %s992_s12 = smov %s860_s13 }
 0x27a   : > { %p11_p5 = scmp.ge.s32.totalorder %s14_s14, 4   ;;  %s993_s13 = smov %s995_s15 }
 0x27c   :  { %13 = sbr.rel (!%p11_p5) target bundleno = 2 (0x2), region = 109 }

</bundles_post_ra>
